<compile_context>
chip_gen: v6e
topology: v6e:2x2x1
jax: 0.10.0
libtpu: 0.0.40
codegen_flags: <defaults>
</compile_context>

<pallas_src>
import jax
import jax.numpy as jnp
from jax.experimental import pallas as pl
from jax.experimental.pallas import tpu as pltpu


def _swish_kernel(x_ref, o_ref):
    xf = x_ref[...].astype(jnp.float32)
    # sigmoid(x) = 0.5 * tanh(0.5 * x) + 0.5  -> exactly one EUP op (tanh) plus
    # cheap VPU mul/add, guaranteeing compute is hidden under the HBM stream.
    # f32 compute keeps accuracy and is safe on v5e (no bf16 VPU/EUP there).
    sig = 0.5 * jnp.tanh(0.5 * xf) + 0.5
    o_ref[...] = (xf * sig).astype(o_ref.dtype)


def _chip_params():
    """Return (target_block_bytes, vmem_limit_bytes) for the local TPU gen."""
    try:
        kind = jax.devices()[0].device_kind.lower()
    except Exception:
        kind = ""
    if "v6" in kind or "v7" in kind:
        # 32 MiB default scoped VMEM (v6e/v7x): 4 MiB blocks, 3 in + 2 out
        # buffers = 20 MiB, still raise the limit explicitly for headroom.
        return 4 << 20, 32 << 20
    if "v5" in kind:
        # v5e: 16 MiB default scoped VMEM. Keep 2 MiB blocks (10 MiB peak) and
        # raise the limit anyway (physical VMEM is 128 MiB) for headroom.
        return 2 << 20, 32 << 20
    # Unknown chip: conservative block size, keep the default scoped VMEM.
    return 2 << 20, None


def _choose_tiling(rows: int, cols: int, itemsize: int, target_block_bytes: int):
    """Pick (tile_rows, grid_steps) for a (rows, cols) lane-dense slab."""
    # Dtype-native sublane multiple: 8 rows f32, 16 bf16/f16, 32 int8/fp8.
    # Packed dtypes lay rows out in sublane pairs/quads; an 8-but-not-16
    # aligned bf16 block forces relayout + masked edge stores.
    sub = max(8, 32 // itemsize)
    row_bytes = cols * itemsize
    total_bytes = rows * row_bytes

    # Tiny arrays: one full-extent block (always a legal block shape); splitting
    # would be pure per-step overhead on a mem-bound kernel.
    if total_bytes < (1 << 20) or rows < 2 * sub:
        return rows, 1

    # Rows per block from the per-generation byte target.
    tile_rows = max(sub, (target_block_bytes // row_bytes) // sub * sub)

    # Always give the pipeline >= 4 grid steps so DMA/compute/writeback overlap
    # and both v7x TensorCores get at least 2 steps each.
    min_steps = 4
    cap = max(sub, (rows // min_steps) // sub * sub)
    tile_rows = min(tile_rows, cap)
    return tile_rows, pl.cdiv(rows, tile_rows)


def _swish_2d(x2d: jax.Array) -> jax.Array:
    rows, cols = x2d.shape
    itemsize = jnp.dtype(x2d.dtype).itemsize
    target_block_bytes, vmem_limit = _chip_params()
    tile_rows, steps = _choose_tiling(rows, cols, itemsize, target_block_bytes)
    n = rows * cols

    in_spec = pl.BlockSpec((tile_rows, cols), lambda i: (i, 0))
    if steps >= 3:
        # One read stream + one write stream contend for DMA; a third input
        # buffer hides read-issue latency behind the previous block's writeback.
        try:
            in_spec = pl.BlockSpec(
                (tile_rows, cols), lambda i: (i, 0), pipeline_mode=pl.Buffered(3)
            )
        except TypeError:
            pass  # older jax without pipeline_mode: default 2-deep buffering

    cp_kwargs = {"dimension_semantics": ("parallel",)}
    if vmem_limit is not None:
        cp_kwargs["vmem_limit_bytes"] = vmem_limit

    return pl.pallas_call(
        _swish_kernel,
        out_shape=jax.ShapeDtypeStruct((rows, cols), x2d.dtype),
        grid_spec=pltpu.PrefetchScalarGridSpec(
            num_scalar_prefetch=0,
            grid=(steps,),
            in_specs=[in_spec],
            out_specs=pl.BlockSpec((tile_rows, cols), lambda i: (i, 0)),
        ),
        compiler_params=pltpu.CompilerParams(**cp_kwargs),
        cost_estimate=pl.CostEstimate(
            flops=4 * n, transcendentals=n, bytes_accessed=2 * n * itemsize
        ),
    )(x2d)


def swish(x: jax.Array) -> jax.Array:
    """Elementwise Swish via a Pallas TPU kernel (floating dtypes, any shape)."""
    if not jnp.issubdtype(x.dtype, jnp.floating):
        raise TypeError(f"swish expects a floating dtype, got {x.dtype}")
    orig_shape = x.shape
    n = x.size
    if n == 0:
        return x

    # Fast path (the common NN case): total size divides a lane multiple, so a
    # free reshape gives a lane-dense 2D slab — no extra HBM passes.
    for cols in (1024, 512, 256, 128):
        if n % cols == 0:
            out2d = _swish_2d(x.reshape(n // cols, cols))
            return out2d.reshape(orig_shape)

    # Ragged fallback (rare for NN shapes): kernel on the 128-aligned prefix,
    # plain-jnp on the <128-element tail, then concatenate. Avoids the padded
    # copy + trailing-slice passes of a pad-based fallback.
    flat = x.reshape(-1)
    main = (n // 128) * 128
    if main == 0:
        xf = flat.astype(jnp.float32)
        return (xf * jax.nn.sigmoid(xf)).astype(x.dtype).reshape(orig_shape)
    head = _swish_2d(flat[:main].reshape(main // 128, 128)).reshape(-1)
    tail32 = flat[main:].astype(jnp.float32)
    tail = (tail32 * jax.nn.sigmoid(tail32)).astype(x.dtype)
    return jnp.concatenate([head, tail]).reshape(orig_shape)


if __name__ == "__main__":
    def ref_swish(a):
        a32 = a.astype(jnp.float32)
        return (a32 * jax.nn.sigmoid(a32)).astype(a.dtype)

    key = jax.random.PRNGKey(0)

    # (batch=2, channels=4, length=16) — NCL layout of the 1D-CNN VAE activations.
    x = jax.random.normal(key, (2, 4, 16), dtype=jnp.float32)
    y = jax.block_until_ready(swish(x))
    assert y.shape == x.shape and y.dtype == x.dtype
    assert jnp.allclose(y, ref_swish(x), atol=1e-5, rtol=1e-5)

    # 1 MiB f32 slab: exercises the multi-step (>=4) pipelined grid path.
    xm = jax.random.normal(jax.random.PRNGKey(2), (8, 32, 1024), dtype=jnp.float32)
    ym = jax.block_until_ready(swish(xm))
    assert ym.shape == xm.shape and ym.dtype == xm.dtype
    assert jnp.allclose(ym, ref_swish(xm), atol=1e-5, rtol=1e-5)

    # Ragged-size + bf16 check (exercises the prefix+tail fallback path).
    xb = jax.random.normal(jax.random.PRNGKey(1), (2, 8, 100), dtype=jnp.bfloat16)
    yb = jax.block_until_ready(swish(xb))
    assert yb.shape == xb.shape and yb.dtype == xb.dtype
    assert jnp.allclose(
        yb.astype(jnp.float32),
        ref_swish(xb).astype(jnp.float32),
        atol=2e-2,
        rtol=2e-2,
    )

    print("KERNEL_OK")
</pallas_src>

<mosaic_0001>
module attributes {stable_mosaic.version = 11 : i64} {
  func.func @_swish_kernel(%arg0: i32, %arg1: memref<1x128xf32, #tpu.memory_space<vmem>>, %arg2: memref<1x128xf32, #tpu.memory_space<vmem>>) attributes {dimension_semantics = [#tpu.dimension_semantics<parallel>], iteration_bounds = array<i64: 1>, scalar_prefetch = 0 : i64, scratch_operands = 0 : i64, tpu.core_type = #tpu.core_type<tc>, window_params = [{transform_indices = @transform_0, window_bounds = array<i64: 1, 128>}, {transform_indices = @transform_1, window_bounds = array<i64: 1, 128>}]} {
    %c0 = arith.constant 0 : index
    %c0_0 = arith.constant 0 : index
    %0 = vector.load %arg1[%c0, %c0_0] : memref<1x128xf32, #tpu.memory_space<vmem>>, vector<1x128xf32>
    %cst = arith.constant 5.000000e-01 : f32
    %1 = vector.broadcast %cst : f32 to vector<1x128xf32>
    %2 = arith.mulf %1, %0 : vector<1x128xf32>
    %3 = math.tanh %2 : vector<1x128xf32>
    %cst_1 = arith.constant 5.000000e-01 : f32
    %4 = vector.broadcast %cst_1 : f32 to vector<1x128xf32>
    %5 = arith.mulf %4, %3 : vector<1x128xf32>
    %cst_2 = arith.constant 5.000000e-01 : f32
    %6 = vector.broadcast %cst_2 : f32 to vector<1x128xf32>
    %7 = arith.addf %5, %6 : vector<1x128xf32>
    %8 = arith.mulf %0, %7 : vector<1x128xf32>
    %c0_3 = arith.constant 0 : index
    %c0_4 = arith.constant 0 : index
    %9 = vector.load %arg2[%c0_3, %c0_4] : memref<1x128xf32, #tpu.memory_space<vmem>>, vector<1x128xf32>
    tpu.vector_store %arg2[%c0_3, %c0_4], %8 {strides = array<i32>} : memref<1x128xf32, #tpu.memory_space<vmem>>, vector<1x128xf32>,
    return
  }
  func.func @transform_0(%arg0: i32) -> (i32, i32) {
    %c0_i32 = arith.constant 0 : i32
    %c0_i32_0 = arith.constant 0 : i32
    return %arg0, %c0_i32 : i32, i32
  }
  func.func @transform_1(%arg0: i32) -> (i32, i32) {
    %c0_i32 = arith.constant 0 : i32
    %c0_i32_0 = arith.constant 0 : i32
    return %arg0, %c0_i32 : i32, i32
  }
}

</mosaic_0001>

<bundles_post_ra>
// kernel: tpu_custom_call.1
= control target key start
LH: loop header
LB: loop body
LE: loop exit
PB: predicated region body
PF: predicated region fallthrough
CT: control target
= control target key end

     0   :  { %6 = vsyncpa [#allocation3], 0  ;;  %s109_s0 = inlined_call_operand.hbm [shape: f32[1,128], index: 0, kind: input, shape index: {}]   ;;  %s110_s1 = inlined_call_operand.hbm [shape: f32[1,128], index: 1, kind: output, shape index: {}]  }
   0x1   :  { %7 = vsyncpa [#allocation4], 0  ;;  %s91_s6 = smov [#allocation2]  }
   0x2   :  { %s14_s7 = sshll.u32 %s91_s6, 4  ;;  %s15_s7 = int_to_ptr.vmem [resolvable:$true] %s14_s7 }
   0x3   :  { %s55_s8 = scalar_lea.vmem %s15_s7, 16  ;;  %s59_s9 = scalar_lea.vmem %s15_s7, 32 }
   0x4   :  { %p56_p0 = scmp.ne.s32.totalorder %s15_s7, %s55_s8  ;;  %p60_p1 = scmp.lt.s32.totalorder %s15_s7, %s15_s7 }
   0x5   :  { %p61_p2 = scmp.lt.s32.totalorder %s59_s9, %s55_s8 }
   0x7   :  { %p62_p3 = por %p61_p2, %p60_p1 }
   0x9   :  { %p63_p4 = pnand %p62_p3, %p56_p0 }
   0xb   :  { %66 = shalt.err (!%p63_p4)
}
   0xc   :  { %17 = dma.hbm_to_vmem [thread:$0]  %s109_s0, 16, %s15_s7, [#allocation3]  }
   0xd   :  { %87 = dma.done.wait [#allocation3], 16  }
   0xe   :  { %88 = vsyncadd [#allocation3], 4294967280  ;;  %v21_v0 = vld [vmem:[#allocation2] sm:$0x1]  ;;  %s92_s12 = smov [#allocation5]  }
   0xf   :  { %v22_v1 = vmul.f32 0.5, %v21_v0  ;;  %s34_s13 = sshll.u32 %s92_s12, 4  ;;  %s35_s13 = int_to_ptr.vmem [resolvable:$true] %s34_s13 }
  0x10   :  { %s67_s14 = scalar_lea.vmem %s35_s13, 16  ;;  %s71_s15 = scalar_lea.vmem %s35_s13, 32 }
  0x11   :  { %45 = vtanh.f32 %v22_v1  ;;  %p68_p5 = scmp.ne.s32.totalorder %s35_s13, %s67_s14  ;;  %p72_p6 = scmp.lt.s32.totalorder %s35_s13, %s35_s13 }
  0x12   :  { %p73_p7 = scmp.lt.s32.totalorder %s71_s15, %s67_s14 }
  0x14   :  { %p74_p8 = por %p73_p7, %p72_p6 }
  0x16   :  { %p75_p9 = pnand %p74_p8, %p68_p5 }
  0x1e   :  { %v46_v2 = vpop.eup %45 }
  0x1f   :  { %v24_v3 = vmul.f32 0.5, %v46_v2 }
  0x21   :  { %v25_v4 = vadd.f32 0.5, %v24_v3 }
  0x23   :  { %v26_v5 = vmul.f32 %v25_v4, %v21_v0 }
  0x25   :  { %27 = vst [vmem:[#allocation5] sm:$0x1] %v26_v5 }
  0x26   :  { %78 = shalt.err (!%p75_p9)
}
  0x27   :  { %37 = dma.vmem_to_hbm [thread:$0]  %s35_s13, 16, %s110_s1, [#allocation4]  }
  0x28   :  { %89 = dma.done.wait [#allocation4], 16  }
  0x29   :  { %90 = vsyncadd [#allocation4], 4294967280 }
  0x2a   :  { %41 = vsyncpa [#allocation3], 1 }
  0x2b   :  { %42 = vsyncpa [#allocation4], 1 }

</bundles_post_ra>
